<compile_context>
chip_gen: v7x
topology: tpu7x:2x2x1
jax: 0.10.0
libtpu: 0.0.40
codegen_flags: <defaults>
</compile_context>

<pallas_src>
import functools
import math

import jax
import jax.numpy as jnp
from jax.experimental import pallas as pl
from jax.experimental.pallas import tpu as pltpu


def _round_up(x, m):
    return ((x + m - 1) // m) * m


def _cdiv(a, b):
    return (a + b - 1) // b


def _gelu_tanh(x):
    # GPT-2 style tanh-approximate GELU in f32 (EUP tanh overlaps the MXU).
    # TODO(synk): if the reference Gelu() is the exact erf form, switch to
    #             jax.nn.gelu(x, approximate=False).
    c = jnp.float32(math.sqrt(2.0 / math.pi))
    return 0.5 * x * (1.0 + jnp.tanh(c * (x + 0.044715 * (x * x * x))))


def _vmem_capacity_bytes():
    try:
        return int(pltpu.get_tpu_info().vmem_capacity_bytes)
    except Exception:
        return 64 * 1024 * 1024  # conservative (v7x-sized) fallback


# ---------------------------------------------------------------------------
# Kernels
# ---------------------------------------------------------------------------
def _ffn_resident_kernel(x_ref, w1_ref, b1_ref, w2_ref, b2_ref, o_ref):
    # Weights are VMEM-resident (constant index maps -> DMA'd once).
    h = jnp.dot(x_ref[...], w1_ref[...], preferred_element_type=jnp.float32)
    h = _gelu_tanh(h + b1_ref[...].astype(jnp.float32))
    out = jnp.dot(h.astype(w2_ref.dtype), w2_ref[...],
                  preferred_element_type=jnp.float32)
    o_ref[...] = (out + b2_ref[...].astype(jnp.float32)).astype(o_ref.dtype)


def _ffn_streaming_kernel(x_ref, w1_ref, b1_ref, w2_ref, b2_ref, o_ref,
                          acc_ref):
    # x_ref:  (tm, d)   token tile
    # w1_ref: (d, th)   streamed first-layer weight tile (hidden chunk j)
    # b1_ref: (1, th)   streamed first-layer bias chunk
    # w2_ref: (th, d)   streamed second-layer weight tile
    # b2_ref: (1, d)    second-layer bias (constant across grid)
    # o_ref:  (tm, d)   output tile (revisited across the h axis)
    # acc_ref:(tm, d)   f32 accumulator scratch
    j = pl.program_id(1)

    @pl.when(j == 0)
    def _init():
        acc_ref[...] = jnp.zeros_like(acc_ref)

    h = jnp.dot(x_ref[...], w1_ref[...], preferred_element_type=jnp.float32)
    h = _gelu_tanh(h + b1_ref[...].astype(jnp.float32))
    acc_ref[...] += jnp.dot(h.astype(w2_ref.dtype), w2_ref[...],
                            preferred_element_type=jnp.float32)

    @pl.when(j == pl.num_programs(1) - 1)
    def _finalize():
        o_ref[...] = (acc_ref[...] + b2_ref[...].astype(jnp.float32)
                      ).astype(o_ref.dtype)


# ---------------------------------------------------------------------------
# Wrapper
# ---------------------------------------------------------------------------
@functools.partial(jax.jit, static_argnames=("mode", "th_max"))
def feed_forward(x, w1, b1, w2, b2, *, mode="auto", th_max=512):
    """x: [..., d]; w1: [d, H]; b1: [H]; w2: [H, d]; b2: [d]; H = f*d.

    mode: "auto" (pick weight-resident vs streaming by VMEM fit),
          "resident", or "streaming".
    """
    *lead, d = x.shape
    H = w1.shape[1]
    M = 1
    for s in lead:
        M *= s
    x2d = x.reshape(M, d)
    dsize = jnp.dtype(x.dtype).itemsize

    capacity = _vmem_capacity_bytes()
    budget = int(capacity * 0.75)        # tile-footprint planning budget
    vmem_limit = int(capacity * 0.85)    # scoped-VMEM limit handed to Mosaic

    # --- ragged H: pad to a multiple of 128 (zeros are exact no-ops) --------
    H_pad = _round_up(H, 128)
    if H_pad != H:
        w1 = jnp.pad(w1, ((0, 0), (0, H_pad - H)))
        b1 = jnp.pad(b1, ((0, H_pad - H),))
        w2 = jnp.pad(w2, ((0, H_pad - H), (0, 0)))
    b1_2d = b1.reshape(1, H_pad)
    b2_2d = b2.reshape(1, d)

    # --- token tile: big for weight reuse, ragged-M friendly ----------------
    tm_target = 1024 if budget >= 80 * 1024 * 1024 else 512
    n_tok = max(1, _cdiv(M, tm_target))
    tm = _round_up(_cdiv(M, n_tok), 8)   # padding <= 7 rows per tile

    # --- weight-resident fast path? ------------------------------------------
    weight_bytes = (d * H_pad + H_pad + H_pad * d + d) * dsize

    def resident_need(tm_e):
        return (2 * weight_bytes             # weights (budget double buffers)
                + 4 * tm_e * d * dsize       # x + out double buffers
                + tm_e * H_pad * 4           # f32 GELU intermediate
                + tm_e * H_pad * dsize)      # cast copy for second matmul

    use_resident = (mode == "resident") or (
        mode == "auto" and resident_need(tm) <= budget)

    if use_resident:
        # v7x megacore: ensure >=2 token tiles so both TensorCores get work.
        # Free here because resident weights are DMA'd once regardless.
        if _cdiv(M, tm) == 1 and tm >= 16:
            tm = _round_up(_cdiv(M, 2), 8)
        M_pad = _round_up(M, tm)
        if M_pad != M:
            x2d = jnp.pad(x2d, ((0, M_pad - M), (0, 0)))

        out = pl.pallas_call(
            _ffn_resident_kernel,
            out_shape=jax.ShapeDtypeStruct((M_pad, d), x.dtype),
            grid_spec=pltpu.PrefetchScalarGridSpec(
                num_scalar_prefetch=0,
                grid=(M_pad // tm,),
                in_specs=[
                    pl.BlockSpec((tm, d), lambda i: (i, 0)),       # x tile
                    pl.BlockSpec((d, H_pad), lambda i: (0, 0)),    # w1 (resident)
                    pl.BlockSpec((1, H_pad), lambda i: (0, 0)),    # b1 (resident)
                    pl.BlockSpec((H_pad, d), lambda i: (0, 0)),    # w2 (resident)
                    pl.BlockSpec((1, d), lambda i: (0, 0)),        # b2 (resident)
                ],
                out_specs=pl.BlockSpec((tm, d), lambda i: (i, 0)),
            ),
            compiler_params=pltpu.CompilerParams(
                dimension_semantics=("parallel",),
                vmem_limit_bytes=vmem_limit,
            ),
        )(x2d, w1, b1_2d, w2, b2_2d)
    else:
        # hidden tile: largest 128-multiple divisor of H_pad, capped at th_max
        th = 128
        for cand in range(min(th_max, H_pad), 0, -128):
            if H_pad % cand == 0:
                th = cand
                break

        def stream_need(tm_e, th_e):
            return (2 * tm_e * d * dsize          # x double buffer
                    + 2 * d * th_e * dsize        # w1 tile double buffer
                    + 2 * 8 * th_e * dsize        # b1 chunk (sublane padded)
                    + 2 * th_e * d * dsize        # w2 tile double buffer
                    + 2 * 8 * d * dsize           # b2
                    + 2 * tm_e * d * dsize        # out double buffer
                    + tm_e * d * 4                # f32 accumulator scratch
                    + 2 * tm_e * th_e * 4)        # f32 GELU intermediate + cast

        while stream_need(tm, th) > budget and tm > 8:
            tm = _round_up(_cdiv(tm, 2), 8)

        M_pad = _round_up(M, tm)
        if M_pad != M:
            x2d = jnp.pad(x2d, ((0, M_pad - M), (0, 0)))

        out = pl.pallas_call(
            _ffn_streaming_kernel,
            out_shape=jax.ShapeDtypeStruct((M_pad, d), x.dtype),
            grid_spec=pltpu.PrefetchScalarGridSpec(
                num_scalar_prefetch=0,
                grid=(M_pad // tm, H_pad // th),
                in_specs=[
                    pl.BlockSpec((tm, d), lambda i, j: (i, 0)),    # x tile
                    pl.BlockSpec((d, th), lambda i, j: (0, j)),    # w1 tile
                    pl.BlockSpec((1, th), lambda i, j: (0, j)),    # b1 chunk
                    pl.BlockSpec((th, d), lambda i, j: (j, 0)),    # w2 tile
                    pl.BlockSpec((1, d), lambda i, j: (0, 0)),     # b2
                ],
                out_specs=pl.BlockSpec((tm, d), lambda i, j: (i, 0)),
                scratch_shapes=[pltpu.VMEM((tm, d), jnp.float32)],
            ),
            compiler_params=pltpu.CompilerParams(
                dimension_semantics=("parallel", "arbitrary"),
                vmem_limit_bytes=vmem_limit,
            ),
        )(x2d, w1, b1_2d, w2, b2_2d)

    out = out[:M]
    return out.reshape(*lead, d)


def _reference(x, w1, b1, w2, b2):
    h = x @ w1 + b1
    h = _gelu_tanh(h)
    return h @ w2 + b2


if __name__ == "__main__":
    # GptConfig-like small shapes: embedding_dimension=128 (lane-dense),
    # forward_layer_size=4 -> hidden=512.
    batch, seq, d, f = 2, 8, 128, 4
    hidden = f * d  # 512

    key = jax.random.PRNGKey(0)
    k_x, k_w1, k_b1, k_w2, k_b2 = jax.random.split(key, 5)

    # torch.nn.Linear-style init: U(-1/sqrt(in), +1/sqrt(in))
    bound1 = 1.0 / jnp.sqrt(d)
    bound2 = 1.0 / jnp.sqrt(hidden)
    w1 = jax.random.uniform(k_w1, (d, hidden), jnp.float32, -bound1, bound1)
    b1 = jax.random.uniform(k_b1, (hidden,), jnp.float32, -bound1, bound1)
    w2 = jax.random.uniform(k_w2, (hidden, d), jnp.float32, -bound2, bound2)
    b2 = jax.random.uniform(k_b2, (d,), jnp.float32, -bound2, bound2)

    x = jax.random.normal(k_x, (batch, seq, d), jnp.float32)

    ref = _reference(x.reshape(batch * seq, d), w1, b1, w2, b2
                     ).reshape(batch, seq, d)

    # Auto path (weight-resident for these small weights).
    out_auto = jax.block_until_ready(feed_forward(x, w1, b1, w2, b2))
    assert out_auto.shape == (batch, seq, d)
    assert jnp.allclose(out_auto, ref, atol=1e-4, rtol=1e-4), \
        "resident-path mismatch vs reference"

    # Force the H-streaming path (4 hidden chunks) to exercise the
    # init / accumulate / finalize pipeline as well.
    out_stream = jax.block_until_ready(
        feed_forward(x, w1, b1, w2, b2, mode="streaming", th_max=128))
    assert out_stream.shape == (batch, seq, d)
    assert jnp.allclose(out_stream, ref, atol=1e-4, rtol=1e-4), \
        "streaming-path mismatch vs reference"

    print("KERNEL_OK")
</pallas_src>

<mosaic_0001>
module attributes {stable_mosaic.version = 11 : i64} {
  func.func @_ffn_resident_kernel(%arg0: i32, %arg1: memref<8x128xf32, #tpu.memory_space<vmem>>, %arg2: memref<128x512xf32, #tpu.memory_space<vmem>>, %arg3: memref<1x512xf32, #tpu.memory_space<vmem>>, %arg4: memref<512x128xf32, #tpu.memory_space<vmem>>, %arg5: memref<1x128xf32, #tpu.memory_space<vmem>>, %arg6: memref<8x128xf32, #tpu.memory_space<vmem>>) attributes {dimension_semantics = [#tpu.dimension_semantics<parallel>], iteration_bounds = array<i64: 2>, scalar_prefetch = 0 : i64, scratch_operands = 0 : i64, tpu.core_type = #tpu.core_type<tc>, window_params = [{transform_indices = @transform_0, window_bounds = array<i64: 8, 128>}, {pipeline_mode = #tpu.pipeline_mode<synchronous>, transform_indices = @transform_1, window_bounds = array<i64: 128, 512>}, {pipeline_mode = #tpu.pipeline_mode<synchronous>, transform_indices = @transform_2, window_bounds = array<i64: 1, 512>}, {pipeline_mode = #tpu.pipeline_mode<synchronous>, transform_indices = @transform_3, window_bounds = array<i64: 512, 128>}, {pipeline_mode = #tpu.pipeline_mode<synchronous>, transform_indices = @transform_4, window_bounds = array<i64: 1, 128>}, {transform_indices = @transform_5, window_bounds = array<i64: 8, 128>}]} {
    %c0 = arith.constant 0 : index
    %c0_0 = arith.constant 0 : index
    %0 = vector.load %arg1[%c0, %c0_0] : memref<8x128xf32, #tpu.memory_space<vmem>>, vector<8x128xf32>
    %c0_1 = arith.constant 0 : index
    %c0_2 = arith.constant 0 : index
    %1 = vector.load %arg2[%c0_1, %c0_2] : memref<128x512xf32, #tpu.memory_space<vmem>>, vector<128x512xf32>
    %cst = arith.constant dense<0.000000e+00> : vector<8x512xf32>
    %2 = tpu.matmul %0, %1, %cst {dimension_numbers = #tpu.dot_dimension_numbers<[1], [0], [0], [1], [0, 0, 1, 1], [], []>} : vector<8x128xf32>, vector<128x512xf32>, vector<8x512xf32> -> vector<8x512xf32>
    %c0_3 = arith.constant 0 : index
    %c0_4 = arith.constant 0 : index
    %3 = vector.load %arg3[%c0_3, %c0_4] : memref<1x512xf32, #tpu.memory_space<vmem>>, vector<1x512xf32>
    %4 = vector.broadcast %3 : vector<1x512xf32> to vector<8x512xf32>
    %5 = arith.addf %2, %4 : vector<8x512xf32>
    %cst_5 = arith.constant 5.000000e-01 : f32
    %6 = vector.broadcast %cst_5 : f32 to vector<8x512xf32>
    %7 = arith.mulf %6, %5 : vector<8x512xf32>
    %8 = arith.mulf %5, %5 : vector<8x512xf32>
    %9 = arith.mulf %8, %5 : vector<8x512xf32>
    %cst_6 = arith.constant 4.471500e-02 : f32
    %10 = vector.broadcast %cst_6 : f32 to vector<8x512xf32>
    %11 = arith.mulf %10, %9 : vector<8x512xf32>
    %12 = arith.addf %5, %11 : vector<8x512xf32>
    %cst_7 = arith.constant 0.797884583 : f32
    %13 = vector.broadcast %cst_7 : f32 to vector<8x512xf32>
    %14 = arith.mulf %13, %12 : vector<8x512xf32>
    %15 = math.tanh %14 : vector<8x512xf32>
    %cst_8 = arith.constant 1.000000e+00 : f32
    %16 = vector.broadcast %cst_8 : f32 to vector<8x512xf32>
    %17 = arith.addf %16, %15 : vector<8x512xf32>
    %18 = arith.mulf %7, %17 : vector<8x512xf32>
    %c0_9 = arith.constant 0 : index
    %c0_10 = arith.constant 0 : index
    %19 = vector.load %arg4[%c0_9, %c0_10] : memref<512x128xf32, #tpu.memory_space<vmem>>, vector<512x128xf32>
    %cst_11 = arith.constant dense<0.000000e+00> : vector<8x128xf32>
    %20 = tpu.matmul %18, %19, %cst_11 {dimension_numbers = #tpu.dot_dimension_numbers<[1], [0], [0], [1], [0, 0, 1, 1], [], []>} : vector<8x512xf32>, vector<512x128xf32>, vector<8x128xf32> -> vector<8x128xf32>
    %c0_12 = arith.constant 0 : index
    %c0_13 = arith.constant 0 : index
    %21 = vector.load %arg5[%c0_12, %c0_13] : memref<1x128xf32, #tpu.memory_space<vmem>>, vector<1x128xf32>
    %22 = vector.broadcast %21 : vector<1x128xf32> to vector<8x128xf32>
    %23 = arith.addf %20, %22 : vector<8x128xf32>
    %c0_14 = arith.constant 0 : index
    %c0_15 = arith.constant 0 : index
    %24 = vector.load %arg6[%c0_14, %c0_15] : memref<8x128xf32, #tpu.memory_space<vmem>>, vector<8x128xf32>
    tpu.vector_store %arg6[%c0_14, %c0_15], %23 {strides = array<i32>} : memref<8x128xf32, #tpu.memory_space<vmem>>, vector<8x128xf32>,
    return
  }
  func.func @transform_0(%arg0: i32) -> (i32, i32) {
    %c0_i32 = arith.constant 0 : i32
    %c0_i32_0 = arith.constant 0 : i32
    return %arg0, %c0_i32 : i32, i32
  }
  func.func @transform_1(%arg0: i32) -> (i32, i32) {
    %c0_i32 = arith.constant 0 : i32
    %c0_i32_0 = arith.constant 0 : i32
    %c0_i32_1 = arith.constant 0 : i32
    return %c0_i32, %c0_i32_0 : i32, i32
  }
  func.func @transform_2(%arg0: i32) -> (i32, i32) {
    %c0_i32 = arith.constant 0 : i32
    %c0_i32_0 = arith.constant 0 : i32
    %c0_i32_1 = arith.constant 0 : i32
    return %c0_i32, %c0_i32_0 : i32, i32
  }
  func.func @transform_3(%arg0: i32) -> (i32, i32) {
    %c0_i32 = arith.constant 0 : i32
    %c0_i32_0 = arith.constant 0 : i32
    %c0_i32_1 = arith.constant 0 : i32
    return %c0_i32, %c0_i32_0 : i32, i32
  }
  func.func @transform_4(%arg0: i32) -> (i32, i32) {
    %c0_i32 = arith.constant 0 : i32
    %c0_i32_0 = arith.constant 0 : i32
    %c0_i32_1 = arith.constant 0 : i32
    return %c0_i32, %c0_i32_0 : i32, i32
  }
  func.func @transform_5(%arg0: i32) -> (i32, i32) {
    %c0_i32 = arith.constant 0 : i32
    %c0_i32_0 = arith.constant 0 : i32
    return %arg0, %c0_i32 : i32, i32
  }
}

</mosaic_0001>

<bundles_post_ra>
// kernel: feed_forward.1
= control target key start
LH: loop header
LB: loop body
LE: loop exit
PB: predicated region body
PF: predicated region fallthrough
CT: control target
= control target key end

     0   :  { %10 = vsyncpa [#allocation3], 0  ;;  %s1583_s0 = inlined_call_operand.hbm [shape: f32[16,128], index: 0, kind: input, shape index: {}]   ;;  %s1584_s1 = inlined_call_operand.hbm [shape: f32[128,512], index: 1, kind: input, shape index: {}]   ;;  %s1585_s2 = inlined_call_operand.vmem [shape: f32[1,512], index: 2, kind: input, shape index: {}]   ;;  %s1586_s3 = inlined_call_operand.hbm [shape: f32[512,128], index: 3, kind: input, shape index: {}]   ;;  %s1587_s4 = inlined_call_operand.vmem [shape: f32[1,128], index: 4, kind: input, shape index: {}]   ;;  %s1588_s5 = inlined_call_operand.hbm [shape: f32[16,128], index: 5, kind: output, shape index: {}]  }
   0x1   :  { %12 = vsyncpa [#allocation3 + $0x1], 0 }
   0x2   :  { %13 = vsyncpa [#allocation6], 0 }
   0x3   :  { %14 = vsyncpa [#allocation4], 0 }
   0x4   :  { %16 = vsyncpa [#allocation4 + $0x1], 0  ;;  %s1341_s18 = smov 0   ;;  %s1343_s19 = smov 0  }
   0x5   :  { %s1345_s20 = smov 0   ;;  %s1347_s21 = smov 0  }
   0x6 LB: > { %s1362_s22 = sadd.s32 4294967295, %s1300_s21   ;;  %s849_s23 = sadd.s32 4294967294, %s1300_s21   ;;  %s1300_s21 = sphi %s1347_s21, %s1608_s21   ;;  %s1296_s20 = sphi %s1345_s20, %s1607_s20   ;;  %s1292_s19 = sphi %s1343_s19, %s1606_s19   ;;  %s1288_s18 = sphi %s1341_s18, %s1605_s18  }
   0x7   : > { %p42_p0 = scmp.ne.s32.totalorder %s1292_s19, %s1288_s18  ;;  %p1589_p1 = scmp.eq.s32.totalorder %s1362_s22, 0 }
   0x8   : > { %p156_p3 = scmp.eq.s32.totalorder %s849_s23, 1  ;;  %p850_p5 = scmp.ge.s32.totalorder %s1300_s21, 1 }
   0x9   : > { %p1371_p4 = por %p1589_p1, %p42_p0  ;;  %p163_p7 = scmp.lt.s32.totalorder %s1300_s21, 3 }
   0xa   : > { %p1376_p6 = por %p156_p3, %p42_p0  ;;  %s1302_s27 = smov [#allocation5]  }
   0xb   : > { %s1592_s24 = scalar_select %p1371_p4, 1, 0 }
   0xc   : > { %s1593_s25 = scalar_select %p1376_p6, 1, 0 }
   0xd   : > { %p1381_p8 = pnand %p850_p5, %p163_p7  ;;  %s175_s28 = sshll.u32 %s1302_s27, 4  ;;  %s1385_s28 = int_to_ptr.vmem [resolvable:$true] %s175_s28 }
   0xe   : > { %s1303_s30 = smov [#allocation7]   ;;  %s1144_s9 = scalar_lea.hbm %s1584_s1, 8192 }
   0xf   : > { %p1076_p9 = pneg %p1381_p8  ;;  %s191_s6 = sshll.u32 %s1303_s30, 4  ;;  %s1396_s6 = int_to_ptr.vmem [resolvable:$true] %s191_s6 }
  0x10   : > { %p1145_p12 = scmp.ne.s32.totalorder %s1584_s1, %s1144_s9  ;;  %p1151_p5 = scmp.lt.u32.totalorder %s1144_s9, %s1584_s1 }
  0x11   : > { %p1392_p11 = pnand %p1076_p9, %p1589_p1 }
  0x13   : > { %p1146_p13 = pneg %p1392_p11 }
  0x15   : > { %p1147_p0 = pnand %p1146_p13, %p1145_p12 }
  0x17   : > { %p1148_p3 = pneg %p1147_p0 }
  0x19   : > { %p1153_p7 = pnand %p1151_p5, %p1148_p3 }
  0x1b   : > { %1156 = shalt.err (!%p1153_p7)
}
  0x1c   : > { %s1157_s14 = scalar_lea.vmem %s1385_s28, 8192  ;;  %p1165_p2 = scmp.lt.s32.totalorder %s1385_s28, %s1385_s28 }
  0x1d   : > { %p1158_p9 = scmp.ne.s32.totalorder %s1385_s28, %s1157_s14  ;;  %p1166_p12 = scmp.lt.s32.totalorder %s1157_s14, %s1157_s14 }
  0x1f   : > { %p1160_p10 = pnand %p1158_p9, %p1146_p13  ;;  %p1167_p0 = por %p1166_p12, %p1165_p2 }
  0x21   : > { %p1161_p1 = pneg %p1160_p10 }
  0x23   : > { %p1168_p6 = pnand %p1167_p0, %p1161_p1 }
  0x25   : > { %1171 = shalt.err (!%p1168_p6)
}
  0x26   : > { %s1304_s15 = smov 512   ;;  %s1305_s16 = smov 32  }
  0x27   : > { %1079 = dma.hbm_to_vmem [thread:$0]  (!%p1392_p11), %s1584_s1, 8192, %s1385_s28, [#allocation6], %s1304_s15, %s1304_s15, %s1305_s16  }
  0x28   : > { %s1172_s7 = scalar_lea.hbm %s1586_s3, 8192 }
  0x29   : > { %p1173_p2 = scmp.ne.s32.totalorder %s1586_s3, %s1172_s7  ;;  %p1179_p10 = scmp.lt.u32.totalorder %s1172_s7, %s1586_s3 }
  0x2b   : > { %p1175_p1 = pnand %p1173_p2, %p1146_p13 }
  0x2d   : > { %p1176_p6 = pneg %p1175_p1 }
  0x2f   : > { %p1181_p3 = pnand %p1179_p10, %p1176_p6 }
  0x31   : > { %1184 = shalt.err (!%p1181_p3)
}
  0x32   : > { %s1185_s28 = scalar_lea.vmem %s1396_s6, 8192  ;;  %p1193_p12 = scmp.lt.s32.totalorder %s1396_s6, %s1396_s6 }
  0x33   : > { %p1186_p5 = scmp.ne.s32.totalorder %s1396_s6, %s1185_s28  ;;  %p1194_p0 = scmp.lt.s32.totalorder %s1185_s28, %s1185_s28 }
  0x35   : > { %p1188_p7 = pnand %p1186_p5, %p1146_p13  ;;  %p1195_p2 = por %p1194_p0, %p1193_p12 }
  0x37   : > { %p1189_p9 = pneg %p1188_p7 }
  0x39   : > { %p1196_p1 = pnand %p1195_p2, %p1189_p9 }
  0x3b   : > { %1199 = shalt.err (!%p1196_p1)
}
  0x3c   : > { %s1306_s12 = smov 128   ;;  %s1307_s13 = smov 8  }
  0x3d   : > { %1082 = dma.hbm_to_vmem [thread:$0]  (!%p1392_p11), %s1586_s3, 8192, %s1396_s6, [#allocation6], %s1306_s12, %s1306_s12, %s1307_s13  }
  0x3e   : > { %s1451_s16 = sadd.s32 1, %s1300_s21   ;;  %s29_s23 = sadd.s32 1, %s1296_s20 }
  0x3f   : > { %s26_s17 = ssub.s32 %s1300_s21, %s1451_s16  ;;  %p36_p6 = scmp.ne.s32.totalorder %s1296_s20, %s1292_s19 }
  0x40   : > { %p27_p13 = scmp.eq.s32.totalorder %s26_s17, 0  ;;  %p37_p10 = scmp.eq.s32.totalorder %s1300_s21, 0 }
  0x41   : > { %p1596_p5 = scmp.eq.s32.totalorder %s1362_s22, 1  ;;  %p1093_p9 = scmp.lt.s32.totalorder %s1300_s21, 2 }
  0x42   : > { %s1460_s27 = scalar_select %p27_p13, %s1296_s20, %s29_s23  }
  0x43   : > { %p38_p3 = por %p37_p10, %p36_p6  ;;  %p1464_p7 = por %p1596_p5, %p36_p6 }
  0x44   : > { %s208_s29 = sand.u32 1, %s1296_s20   ;;  %s855_s6 = sshll.u32 %s1300_s21, 7 }
  0x45   : > { %s1597_s30 = scalar_select %p1464_p7, 1, 0 }
  0x46   : > { %s854_s7 = sshll.u32 %s208_s29, 3  ;;  %s1474_s10 = scalar_lea.hbm %s1583_s0, %s855_s6 }
  0x47   : > { %s212_s11 = scalar_lea.vmem [#allocation2], %s854_s7  ;;  %p1478_p11 = pnand %p1093_p9, %p38_p3 }
  0x48   : > { %s219_s28 = sshll.u32 %s212_s11, 4  ;;  %s209_s13 = scalar_lea.sflag [#allocation3], %s208_s29  ;;  %s1476_s28 = int_to_ptr.vmem [resolvable:$true] %s219_s28 }
  0x49   : > { %s1200_s14 = scalar_lea.hbm %s1474_s10, 128  ;;  %p1202_p0 = pneg %p1478_p11 }
  0x4a   : > { %p1201_p12 = scmp.ne.s32.totalorder %s1474_s10, %s1200_s14  ;;  %s1205_s23 = scalar_lea.hbm %s1583_s0, 256 }
  0x4b   : > { %p1206_p13 = scmp.lt.u32.totalorder %s1474_s10, %s1583_s0  ;;  %p1207_p6 = scmp.lt.u32.totalorder %s1205_s23, %s1200_s14 }
  0x4c   : > { %p1203_p2 = pnand %p1202_p0, %p1201_p12  ;;  %p1209_p3 = scmp.lt.u32.totalorder %s1200_s14, %s1474_s10 }
  0x4d   : > { %p1208_p10 = por %p1207_p6, %p1206_p13 }
  0x4e   : > { %p1204_p1 = pneg %p1203_p2 }
  0x4f   : > { %p1210_p5 = por %p1209_p3, %p1208_p10 }
  0x51   : > { %p1211_p9 = pnand %p1210_p5, %p1204_p1 }
  0x53   : > { %1214 = shalt.err (!%p1211_p9)
}
  0x54   : > { %s1215_s29 = scalar_lea.vmem %s1476_s28, 128  ;;  %s1308_s8 = smov [#allocation2]  }
  0x55   : > { %p1216_p12 = scmp.ne.s32.totalorder %s1476_s28, %s1215_s29  ;;  %s1220_s9 = sshll.u32 %s1308_s8, 4  ;;  %s1221_s9 = int_to_ptr.vmem [resolvable:$false] %s1220_s9 }
  0x56   : > { %s1222_s11 = scalar_lea.vmem %s1221_s9, 256  ;;  %p1223_p4 = scmp.lt.s32.totalorder %s1476_s28, %s1221_s9 }
  0x57   : > { %p1218_p2 = pnand %p1216_p12, %p1202_p0  ;;  %p1224_p13 = scmp.lt.s32.totalorder %s1222_s11, %s1215_s29 }
  0x59   : > { %p1219_p7 = pneg %p1218_p2  ;;  %p1225_p6 = por %p1224_p13, %p1223_p4 }
  0x5b   : > { %p1226_p10 = pnand %p1225_p6, %p1219_p7 }
  0x5d   : > { %1229 = shalt.err (!%p1226_p10)
}
  0x5e   : > { %1086 = dma.hbm_to_vmem [thread:$0]  (!%p1478_p11), %s1474_s10, 128, %s1476_s28, %s209_s13  }
  0x5f   : > { %228 = sbr.rel (%p1381_p8) target bundleno = 617 (0x269), region = 40  ;;  %s1510_s14 = sand.u32 (!%p1381_p8), 1, %s1292_s19  }
  0x60   : > { %s857_s15 = sshll.u32 (!%p1381_p8), %s1510_s14, 3  ;;  %s231_s17 = scalar_lea.sflag (!%p1381_p8), [#allocation3], %s1510_s14 }
  0x61   : > { %s1516_s23 = scalar_lea.vmem (!%p1381_p8), [#allocation2], %s857_s15  ;;  %p1599_p4 = scmp.ne.s32.totalorder (!%p1381_p8), %s1592_s24, 0 }
  0x66   : > { %1275 = dma.done.wait (%p1599_p4), %s231_s17, 128  }
  0x67   : > { %1277 = vsyncadd (%p1599_p4), %s231_s17, 4294967168  ;;  %p1600_p7 = scmp.eq.s32.totalorder %s1362_s22, 0 }
  0x69   : > { %1279 = dma.done.wait (%p1600_p7), [#allocation6], 16384   ;;  %p1601_p8 = pmov %p1600_p7 }
  0x6a   : > { %v1309_v0 = vmov 0.0   ;;  %v271_v1 = vld [vmem:[#allocation5 + $0x8] sm:$0xff]  ;;  %v273_v3 = vld [vmem:[#allocation5 + $0x18] sm:$0xff]  ;;  %v270_v6 = vld [vmem:[#allocation5] sm:$0xff]  ;;  %s863_s12 = sshll.u32 %s1362_s22, 7  ;;  %s268_s13 = scalar_lea.vmem [#allocation8], %s857_s15 }
  0x6b   : > { %1281 = vsyncadd (%p1601_p8), [#allocation6], 4294950912  ;;  %420 = vmatprep.mubr.f32.mxu0 %v1309_v0  ;;  %491 = vmatprep.mubr.f32.mxu1 %v1309_v0  ;;  %v275_v2 = vld [vmem:[#allocation5 + $0x28] sm:$0xff]  ;;  %v277_v5 = vld [vmem:[#allocation5 + $0x38] sm:$0xff]  ;;  %s760_s7 = sshll.u32 %s268_s13, 4  ;;  %s1539_s8 = scalar_lea.hbm %s1588_s5, %s863_s12  ;;  %s1541_s7 = int_to_ptr.vmem [resolvable:$true] %s760_s7 }
  0x6c   : > { %v936_v4 = vpack.c.bf16 %v275_v2, %v271_v1  ;;  %v274_v7 = vld [vmem:[#allocation5 + $0x20] sm:$0xff]  ;;  %v968_v8 = vpack.c.bf16 %v277_v5, %v273_v3  ;;  %v272_v10 = vld [vmem:[#allocation5 + $0x10] sm:$0xff]  ;;  %v279_v12 = vld [vmem:[#allocation5 + $0x48] sm:$0xff]  ;;  %s747_s9 = scalar_lea.sflag [#allocation4], %s1510_s14  ;;  %s1230_s11 = scalar_lea.vmem %s1541_s7, 128 }
  0x6d   : > { %v938_v9 = vpack.c.bf16 %v274_v7, %v270_v6  ;;  %v276_v11 = vld [vmem:[#allocation5 + $0x30] sm:$0xff]  ;;  %v283_v14 = vld [vmem:[#allocation5 + $0x68] sm:$0xff]  ;;  %v281_v15 = vld [vmem:[#allocation5 + $0x58] sm:$0xff]  ;;  %p1231_p11 = scmp.ne.s32.totalorder %s1541_s7, %s1230_s11  ;;  %p1602_p0 = scmp.ne.s32.totalorder %s1597_s30, 0 }
  0x6e   : > { %937 = vmatprep.subr.bf16.mxu0 %v936_v4  ;;  %v970_v13 = vpack.c.bf16 %v276_v11, %v272_v10  ;;  %v285_v16 = vld [vmem:[#allocation5 + $0x78] sm:$0xff]  ;;  %969 = vmatprep.subr.bf16.mxu1 %v968_v8  ;;  %v940_v17 = vpack.c.bf16 %v283_v14, %v279_v12  ;;  %v278_v19 = vld [vmem:[#allocation5 + $0x40] sm:$0xff]  ;;  %v280_v21 = vld [vmem:[#allocation5 + $0x50] sm:$0xff]  ;;  %s1310_s22 = smov [#allocation8]  }
  0x6f   : > { %939 = vmatpush1.bf16.msra.mxu0 %v938_v9  ;;  %v972_v18 = vpack.c.bf16 %v285_v16, %v281_v15  ;;  %v282_v20 = vld [vmem:[#allocation5 + $0x60] sm:$0xff]  ;;  %v284_v23 = vld [vmem:[#allocation5 + $0x70] sm:$0xff]  ;;  %v287_v24 = vld [vmem:[#allocation5 + $0x88] sm:$0xff]  ;;  %p1232_p1 = pnand %p1231_p11, %p1602_p0  ;;  %s1234_s15 = sshll.u32 %s1310_s22, 4  ;;  %s1235_s15 = int_to_ptr.vmem [resolvable:$false] %s1234_s15 }
  0x70   : > { %971 = vmatpush1.bf16.msra.mxu1 %v970_v13  ;;  %v942_v22 = vpack.c.bf16 %v282_v20, %v278_v19  ;;  %v291_v25 = vld [vmem:[#allocation5 + $0xa8] sm:$0xff]  ;;  %941 = vmatprep.subr.bf16.mxu0 %v940_v17  ;;  %v974_v26 = vpack.c.bf16 %v284_v23, %v280_v21  ;;  %v289_v28 = vld [vmem:[#allocation5 + $0x98] sm:$0xff]  ;;  %v286_v30 = vld [vmem:[#allocation5 + $0x80] sm:$0xff]  ;;  %s1236_s17 = scalar_lea.vmem %s1235_s15, 256  ;;  %p1237_p5 = scmp.lt.s32.totalorder %s1541_s7, %s1235_s15 }
  0x71   : > { %973 = vmatprep.subr.bf16.mxu1 %v972_v18  ;;  %v944_v27 = vpack.c.bf16 %v291_v25, %v287_v24  ;;  %v293_v29 = vld [vmem:[#allocation5 + $0xb8] sm:$0xff]  ;;  %v290_v32 = vld [vmem:[#allocation5 + $0xa0] sm:$0xff]  ;;  %v288_v33 = vld [vmem:[#allocation5 + $0x90] sm:$0xff]  ;;  %p1233_p3 = pneg %p1232_p1  ;;  %p1238_p9 = scmp.lt.s32.totalorder %s1236_s17, %s1230_s11 }
  0x72   : > { %v976_v31 = vpack.c.bf16 %v293_v29, %v289_v28  ;;  %v292_v34 = vld [vmem:[#allocation5 + $0xb0] sm:$0xff]  ;;  %v946_v35 = vpack.c.bf16 %v290_v32, %v286_v30  ;;  %v295_v36 = vld [vmem:[#allocation5 + $0xc8] sm:$0xff]  ;;  %v297_v38 = vld [vmem:[#allocation5 + $0xd8] sm:$0xff] }
  0x73   : > { %943 = vmatpush1.bf16.msra.mxu0 %v942_v22  ;;  %v299_v37 = vld [vmem:[#allocation5 + $0xe8] sm:$0xff]  ;;  %v978_v39 = vpack.c.bf16 %v292_v34, %v288_v33  ;;  %v301_v41 = vld [vmem:[#allocation5 + $0xf8] sm:$0xff]  ;;  %v294_v42 = vld [vmem:[#allocation5 + $0xc0] sm:$0xff]  ;;  %p1239_p12 = por %p1238_p9, %p1237_p5 }
  0x74   : > { %975 = vmatpush1.bf16.msra.mxu1 %v974_v26  ;;  %945 = vmatprep.subr.bf16.mxu0 %v944_v27  ;;  %v948_v40 = vpack.c.bf16 %v299_v37, %v295_v36  ;;  %v298_v43 = vld [vmem:[#allocation5 + $0xe0] sm:$0xff]  ;;  %v980_v44 = vpack.c.bf16 %v301_v41, %v297_v38  ;;  %v296_v45 = vld [vmem:[#allocation5 + $0xd0] sm:$0xff]  ;;  %v303_v47 = vld [vmem:[#allocation5 + $0x108] sm:$0xff] }
  0x75   : > { %977 = vmatprep.subr.bf16.mxu1 %v976_v31  ;;  %v300_v46 = vld [vmem:[#allocation5 + $0xf0] sm:$0xff]  ;;  %v307_v48 = vld [vmem:[#allocation5 + $0x128] sm:$0xff]  ;;  %v305_v49 = vld [vmem:[#allocation5 + $0x118] sm:$0xff]  ;;  %v950_v51 = vpack.c.bf16 %v298_v43, %v294_v42  ;;  %p1240_p2 = pnand %p1239_p12, %p1233_p3 }
  0x76   : > { %v309_v50 = vld [vmem:[#allocation5 + $0x138] sm:$0xff]  ;;  %v982_v52 = vpack.c.bf16 %v300_v46, %v296_v45  ;;  %v952_v53 = vpack.c.bf16 %v307_v48, %v303_v47  ;;  %v302_v54 = vld [vmem:[#allocation5 + $0x100] sm:$0xff]  ;;  %v304_v56 = vld [vmem:[#allocation5 + $0x110] sm:$0xff] }
  0x77   : > { %947 = vmatpush1.bf16.msra.mxu0 %v946_v35  ;;  %v306_v55 = vld [vmem:[#allocation5 + $0x120] sm:$0xff]  ;;  %v984_v57 = vpack.c.bf16 %v309_v50, %v305_v49  ;;  %v308_v58 = vld [vmem:[#allocation5 + $0x130] sm:$0xff]  ;;  %v311_v59 = vld [vmem:[#allocation5 + $0x148] sm:$0xff] }
  0x78   : > { %979 = vmatpush1.bf16.msra.mxu1 %v978_v39  ;;  %949 = vmatprep.subr.bf16.mxu0 %v948_v40  ;;  %v315_v60 = vld [vmem:[#allocation5 + $0x168] sm:$0xff]  ;;  %v313_v61 = vld [vmem:[#allocation5 + $0x158] sm:$0xff]  ;;  %v954_v63 = vpack.c.bf16 %v306_v55, %v302_v54  ;;  %v986_v0 = vpack.c.bf16 %v308_v58, %v304_v56  ;;  %v310_v2 = vld [vmem:[#allocation5 + $0x140] sm:$0xff] }
  0x79   : > { %981 = vmatprep.subr.bf16.mxu1 %v980_v44  ;;  %v317_v62 = vld [vmem:[#allocation5 + $0x178] sm:$0xff]  ;;  %v956_v1 = vpack.c.bf16 %v315_v60, %v311_v59  ;;  %v314_v3 = vld [vmem:[#allocation5 + $0x160] sm:$0xff]  ;;  %v312_v4 = vld [vmem:[#allocation5 + $0x150] sm:$0xff] }
  0x7a   : > { %v988_v5 = vpack.c.bf16 %v317_v62, %v313_v61  ;;  %v316_v6 = vld [vmem:[#allocation5 + $0x170] sm:$0xff]  ;;  %v319_v7 = vld [vmem:[#allocation5 + $0x188] sm:$0xff]  ;;  %v321_v9 = vld [vmem:[#allocation5 + $0x198] sm:$0xff]  ;;  %v958_v11 = vpack.c.bf16 %v314_v3, %v310_v2 }
  0x7b   : > { %951 = vmatpush1.bf16.msra.mxu0 %v950_v51  ;;  %v323_v8 = vld [vmem:[#allocation5 + $0x1a8] sm:$0xff]  ;;  %v325_v10 = vld [vmem:[#allocation5 + $0x1b8] sm:$0xff]  ;;  %v990_v12 = vpack.c.bf16 %v316_v6, %v312_v4  ;;  %v318_v14 = vld [vmem:[#allocation5 + $0x180] sm:$0xff] }
  0x7c   : > { %983 = vmatpush1.bf16.msra.mxu1 %v982_v52  ;;  %953 = vmatprep.subr.bf16.mxu0 %v952_v53  ;;  %v960_v13 = vpack.c.bf16 %v323_v8, %v319_v7  ;;  %v322_v15 = vld [vmem:[#allocation5 + $0x1a0] sm:$0xff]  ;;  %v320_v16 = vld [vmem:[#allocation5 + $0x190] sm:$0xff]  ;;  %v992_v17 = vpack.c.bf16 %v325_v10, %v321_v9  ;;  %v327_v19 = vld [vmem:[#allocation5 + $0x1c8] sm:$0xff] }
  0x7d   : > { %985 = vmatprep.subr.bf16.mxu1 %v984_v57  ;;  %v324_v18 = vld [vmem:[#allocation5 + $0x1b0] sm:$0xff]  ;;  %v331_v20 = vld [vmem:[#allocation5 + $0x1e8] sm:$0xff]  ;;  %v329_v21 = vld [vmem:[#allocation5 + $0x1d8] sm:$0xff]  ;;  %v962_v23 = vpack.c.bf16 %v322_v15, %v318_v14 }
  0x7e   : > { %v333_v22 = vld [vmem:[#allocation5 + $0x1f8] sm:$0xff]  ;;  %v994_v24 = vpack.c.bf16 %v324_v18, %v320_v16  ;;  %v964_v25 = vpack.c.bf16 %v331_v20, %v327_v19  ;;  %v326_v26 = vld [vmem:[#allocation5 + $0x1c0] sm:$0xff]  ;;  %v328_v28 = vld [vmem:[#allocation5 + $0x1d0] sm:$0xff] }
  0x7f   : > { %955 = vmatpush1.bf16.msra.mxu0 %v954_v63  ;;  %v330_v27 = vld [vmem:[#allocation5 + $0x1e0] sm:$0xff]  ;;  %v996_v29 = vpack.c.bf16 %v333_v22, %v329_v21  ;;  %v332_v30 = vld [vmem:[#allocation5 + $0x1f0] sm:$0xff]  ;;  %v551_v32 = vld [vmem:[#allocation7 + $0x88] sm:$0xff] }
  0x80   : > { %987 = vmatpush1.bf16.msra.mxu1 %v986_v0  ;;  %957 = vmatprep.subr.bf16.mxu0 %v956_v1  ;;  %v550_v31 = vld [vmem:[#allocation7 + $0x80] sm:$0xff]  ;;  %v583_v34 = vld [vmem:[#allocation7 + $0x188] sm:$0xff]  ;;  %v966_v35 = vpack.c.bf16 %v330_v27, %v326_v26  ;;  %v998_v36 = vpack.c.bf16 %v332_v30, %v328_v28  ;;  %v269_v43 = vld [vmem:[%s1516_s23] sm:$0xff] }
  0x81   : > { %989 = vmatprep.subr.bf16.mxu1 %v988_v5  ;;  %v582_v33 = vld [vmem:[#allocation7 + $0x180] sm:$0xff]  ;;  %v1000_v37 = vpack.c.bf16 %v551_v32, %v550_v31  ;;  %v535_v39 = vld [vmem:[#allocation7 + $0x8] sm:$0xff]  ;;  %v552_v46 = vld [vmem:[#allocation7 + $0x90] sm:$0xff] }
  0x82   : > { %v534_v38 = vld [vmem:[#allocation7] sm:$0xff]  ;;  %v1032_v40 = vpack.c.bf16 %v583_v34, %v582_v33  ;;  %v567_v42 = vld [vmem:[#allocation7 + $0x108] sm:$0xff]  ;;  %v553_v47 = vld [vmem:[#allocation7 + $0x98] sm:$0xff] }
  0x83   : > { %959 = vmatpush1.bf16.msra.mxu0 %v958_v11  ;;  %v566_v41 = vld [vmem:[#allocation7 + $0x100] sm:$0xff]  ;;  %v1002_v44 = vpack.c.bf16 %v535_v39, %v534_v38  ;;  %v584_v48 = vld [vmem:[#allocation7 + $0x190] sm:$0xff]  ;;  %v1004_v49 = vpack.c.bf16 %v553_v47, %v552_v46  ;;  %v585_v50 = vld [vmem:[#allocation7 + $0x198] sm:$0xff] }
  0x84   : > { %991 = vmatpush1.bf16.msra.mxu1 %v990_v12  ;;  %961 = vmatprep.subr.bf16.mxu0 %v960_v13  ;;  %v1034_v45 = vpack.c.bf16 %v567_v42, %v566_v41  ;;  %v536_v51 = vld [vmem:[#allocation7 + $0x10] sm:$0xff]  ;;  %v537_v52 = vld [vmem:[#allocation7 + $0x18] sm:$0xff]  ;;  %v1036_v53 = vpack.c.bf16 %v585_v50, %v584_v48  ;;  %v554_v58 = vld [vmem:[#allocation7 + $0xa0] sm:$0xff] }
  0x85   : > { %993 = vmatprep.subr.bf16.mxu1 %v992_v17  ;;  %v1006_v54 = vpack.c.bf16 %v537_v52, %v536_v51  ;;  %v568_v55 = vld [vmem:[#allocation7 + $0x110] sm:$0xff]  ;;  %v569_v56 = vld [vmem:[#allocation7 + $0x118] sm:$0xff]  ;;  %v555_v59 = vld [vmem:[#allocation7 + $0xa8] sm:$0xff] }
  0x86   : > { %v1038_v57 = vpack.c.bf16 %v569_v56, %v568_v55  ;;  %v586_v60 = vld [vmem:[#allocation7 + $0x1a0] sm:$0xff]  ;;  %v1008_v61 = vpack.c.bf16 %v555_v59, %v554_v58  ;;  %v587_v62 = vld [vmem:[#allocation7 + $0x1a8] sm:$0xff]  ;;  %v556_v6 = vld [vmem:[#allocation7 + $0xb0] sm:$0xff] }
  0x87   : > { %963 = vmatpush1.bf16.msra.mxu0 %v962_v23  ;;  %v538_v63 = vld [vmem:[#allocation7 + $0x20] sm:$0xff]  ;;  %v539_v0 = vld [vmem:[#allocation7 + $0x28] sm:$0xff]  ;;  %v1040_v1 = vpack.c.bf16 %v587_v62, %v586_v60  ;;  %v557_v7 = vld [vmem:[#allocation7 + $0xb8] sm:$0xff] }
  0x88   : > { %995 = vmatpush1.bf16.msra.mxu1 %v994_v24  ;;  %965 = vmatprep.subr.bf16.mxu0 %v964_v25  ;;  %v1010_v2 = vpack.c.bf16 %v539_v0, %v538_v63  ;;  %v570_v3 = vld [vmem:[#allocation7 + $0x120] sm:$0xff]  ;;  %v571_v4 = vld [vmem:[#allocation7 + $0x128] sm:$0xff]  ;;  %v588_v8 = vld [vmem:[#allocation7 + $0x1b0] sm:$0xff]  ;;  %v1012_v9 = vpack.c.bf16 %v557_v7, %v556_v6 }
  0x89   : > { %997 = vmatprep.subr.bf16.mxu1 %v996_v29  ;;  %v1042_v5 = vpack.c.bf16 %v571_v4, %v570_v3  ;;  %v589_v10 = vld [vmem:[#allocation7 + $0x1b8] sm:$0xff]  ;;  %v540_v11 = vld [vmem:[#allocation7 + $0x30] sm:$0xff]  ;;  %v558_v18 = vld [vmem:[#allocation7 + $0xc0] sm:$0xff] }
  0x8a   : > { %v541_v12 = vld [vmem:[#allocation7 + $0x38] sm:$0xff]  ;;  %v1044_v13 = vpack.c.bf16 %v589_v10, %v588_v8  ;;  %v572_v15 = vld [vmem:[#allocation7 + $0x130] sm:$0xff]  ;;  %v559_v19 = vld [vmem:[#allocation7 + $0xc8] sm:$0xff] }
  0x8b   : > { %967 = vmatpush1.bf16.msra.mxu0 %v966_v35  ;;  %v1014_v14 = vpack.c.bf16 %v541_v12, %v540_v11  ;;  %v573_v16 = vld [vmem:[#allocation7 + $0x138] sm:$0xff]  ;;  %v590_v20 = vld [vmem:[#allocation7 + $0x1c0] sm:$0xff]  ;;  %v1016_v21 = vpack.c.bf16 %v559_v19, %v558_v18  ;;  %v591_v22 = vld [vmem:[#allocation7 + $0x1c8] sm:$0xff] }
  0x8c   : > { %999 = vmatpush1.bf16.msra.mxu1 %v998_v36  ;;  %1001 = vmatprep.subr.bf16.mxu0 %v1000_v37  ;;  %v1046_v17 = vpack.c.bf16 %v573_v16, %v572_v15  ;;  %v542_v23 = vld [vmem:[#allocation7 + $0x40] sm:$0xff]  ;;  %v543_v24 = vld [vmem:[#allocation7 + $0x48] sm:$0xff]  ;;  %v1048_v25 = vpack.c.bf16 %v591_v22, %v590_v20  ;;  %v560_v29 = vld [vmem:[#allocation7 + $0xd0] sm:$0xff] }
  0x8d   : > { %1033 = vmatprep.subr.bf16.mxu1 %v1032_v40  ;;  %v1018_v26 = vpack.c.bf16 %v543_v24, %v542_v23  ;;  %v574_v27 = vld [vmem:[#allocation7 + $0x140] sm:$0xff]  ;;  %v575_v28 = vld [vmem:[#allocation7 + $0x148] sm:$0xff]  ;;  %v561_v31 = vld [vmem:[#allocation7 + $0xd8] sm:$0xff] }
  0x8e   : > { %421 = vmatmul.mubr.f32.vlgmr.msra.gmra.mrb[0].mxu0 %v269_v43  ;;  %v1050_v30 = vpack.c.bf16 %v575_v28, %v574_v27  ;;  %v592_v32 = vld [vmem:[#allocation7 + $0x1d0] sm:$0xff]  ;;  %v593_v33 = vld [vmem:[#allocation7 + $0x1d8] sm:$0xff]  ;;  %v1020_v34 = vpack.c.bf16 %v561_v31, %v560_v29  ;;  %v562_v41 = vld [vmem:[#allocation7 + $0xe0] sm:$0xff] }
  0x8f   : > { %492 = vmatmul.mubr.f32.vlgmr.msra.gmra.mrb[0].mxu1 %v269_v43  ;;  %1003 = vmatpush3.bf16.msra.mxu0 %v1002_v44  ;;  %v1052_v35 = vpack.c.bf16 %v593_v33, %v592_v32  ;;  %v544_v36 = vld [vmem:[#allocation7 + $0x50] sm:$0xff]  ;;  %v545_v37 = vld [vmem:[#allocation7 + $0x58] sm:$0xff]  ;;  %v563_v42 = vld [vmem:[#allocation7 + $0xe8] sm:$0xff] }
  0x90   : > { %1035 = vmatpush3.bf16.msra.mxu1 %v1034_v45  ;;  %1005 = vmatprep.subr.bf16.mxu0 %v1004_v49  ;;  %v576_v38 = vld [vmem:[#allocation7 + $0x150] sm:$0xff]  ;;  %v1022_v39 = vpack.c.bf16 %v545_v37, %v544_v36  ;;  %v577_v40 = vld [vmem:[#allocation7 + $0x158] sm:$0xff]  ;;  %v1024_v44 = vpack.c.bf16 %v563_v42, %v562_v41  ;;  %v594_v45 = vld [vmem:[#allocation7 + $0x1e0] sm:$0xff] }
  0x91   : > { %1037 = vmatprep.subr.bf16.mxu1 %v1036_v53  ;;  %v1054_v43 = vpack.c.bf16 %v577_v40, %v576_v38  ;;  %v595_v46 = vld [vmem:[#allocation7 + $0x1e8] sm:$0xff]  ;;  %v546_v47 = vld [vmem:[#allocation7 + $0x60] sm:$0xff]  ;;  %v564_v53 = vld [vmem:[#allocation7 + $0xf0] sm:$0xff] }
  0x92   : > { %v1056_v48 = vpack.c.bf16 %v595_v46, %v594_v45  ;;  %v547_v49 = vld [vmem:[#allocation7 + $0x68] sm:$0xff]  ;;  %v578_v50 = vld [vmem:[#allocation7 + $0x160] sm:$0xff]  ;;  %v596_v55 = vld [vmem:[#allocation7 + $0x1f0] sm:$0xff] }
  0x93   : > { %1007 = vmatpush3.bf16.msra.mxu0 %v1006_v54  ;;  %v579_v51 = vld [vmem:[#allocation7 + $0x168] sm:$0xff]  ;;  %v1026_v52 = vpack.c.bf16 %v547_v49, %v546_v47  ;;  %v565_v54 = vld [vmem:[#allocation7 + $0xf8] sm:$0xff]  ;;  %v548_v59 = vld [vmem:[#allocation7 + $0x70] sm:$0xff] }
  0x94   : > { %1039 = vmatpush3.bf16.msra.mxu1 %v1038_v57  ;;  %1009 = vmatprep.subr.bf16.mxu0 %v1008_v61  ;;  %v1058_v56 = vpack.c.bf16 %v579_v51, %v578_v50  ;;  %v1028_v57 = vpack.c.bf16 %v565_v54, %v564_v53  ;;  %v597_v58 = vld [vmem:[#allocation7 + $0x1f8] sm:$0xff]  ;;  %v580_v62 = vld [vmem:[#allocation7 + $0x170] sm:$0xff] }
  0x95   : > { %1041 = vmatprep.subr.bf16.mxu1 %v1040_v1  ;;  %v549_v60 = vld [vmem:[#allocation7 + $0x78] sm:$0xff]  ;;  %v1060_v61 = vpack.c.bf16 %v597_v58, %v596_v55 }
  0x96   : > { %v581_v63 = vld [vmem:[#allocation7 + $0x178] sm:$0xff]  ;;  %v1030_v0 = vpack.c.bf16 %v549_v60, %v548_v59  ;;  %v861_v59 = vld [vmem:[%s1587_s4] ss:$0 sm:$0xff] }
  0x97   : > { %1011 = vmatpush3.bf16.msra.mxu0 %v1010_v2  ;;  %v1062_v1 = vpack.c.bf16 %v581_v63, %v580_v62  ;;  %v336_v2 = vlaneseq }
  0x98   : > { %1043 = vmatpush3.bf16.msra.mxu1 %v1042_v5  ;;  %1013 = vmatprep.subr.bf16.mxu0 %v1012_v9  ;;  %v334_v5 = vld [vmem:[%s1585_s2] sm:$0xf] }
  0x99   : > { %1045 = vmatprep.subr.bf16.mxu1 %v1044_v13  ;;  %v337_v3 = vshrl.u32 %v336_v2, 7 }
  0x9b   : > { %1015 = vmatpush3.bf16.msra.mxu0 %v1014_v14  ;;  %v338_v4 = vsub.s32 0, %v337_v3  ;;  %v346_v6 = vsub.s32 2, %v337_v3  ;;  %v342_v7 = vsub.s32 1, %v337_v3  ;;  %v350_v8 = vsub.s32 3, %v337_v3 }
  0x9c   : > { %1047 = vmatpush3.bf16.msra.mxu1 %v1046_v17  ;;  %1017 = vmatprep.subr.bf16.mxu0 %v1016_v21 }
  0x9d   : > { %1049 = vmatprep.subr.bf16.mxu1 %v1048_v25  ;;  %v339_v9 = vrot.slane %v334_v5, %v338_v4  ;;  %v347_v10 = vrot.slane %v334_v5, %v346_v6  ;;  %v343_v11 = vrot.slane %v334_v5, %v342_v7  ;;  %v351_v12 = vrot.slane %v334_v5, %v350_v8 }
  0x9f   : > { %1019 = vmatpush3.bf16.msra.mxu0 %v1018_v26 }
  0xa0   : > { %1051 = vmatpush3.bf16.msra.mxu1 %v1050_v30  ;;  %1021 = vmatprep.subr.bf16.mxu0 %v1020_v34 }
  0xa1   : > { %1053 = vmatprep.subr.bf16.mxu1 %v1052_v35 }
  0xa3   : > { %1023 = vmatpush3.bf16.msra.mxu0 %v1022_v39 }
  0xa4   : > { %1055 = vmatpush3.bf16.msra.mxu1 %v1054_v43  ;;  %1025 = vmatprep.subr.bf16.mxu0 %v1024_v44 }
  0xa5   : > { %1057 = vmatprep.subr.bf16.mxu1 %v1056_v48 }
  0xa7   : > { %1027 = vmatpush3.bf16.msra.mxu0 %v1026_v52 }
  0xa8   : > { %1059 = vmatpush3.bf16.msra.mxu1 %v1058_v56  ;;  %1029 = vmatprep.subr.bf16.mxu0 %v1028_v57 }
  0xa9   : > { %1061 = vmatprep.subr.bf16.mxu1 %v1060_v61 }
  0xab   : > { %1031 = vmatpush3.bf16.msra.mxu0 %v1030_v0 }
  0xac   : > { %1063 = vmatpush3.bf16.msra.mxu1 %v1062_v1 }
 0x161   : > { %v422_v13 = vpop.f32.mrb[0].mxu0 }
 0x162   : > { %v423_v14 = vadd.f32 %v422_v13, %v339_v9  ;;  %v493_v15 = vpop.f32.mrb[0].mxu1  ;;  %v424_v16 = vpop.f32.mrb[1].mxu0 }
 0x163   : > { %v494_v17 = vadd.f32 %v493_v15, %v347_v10  ;;  %v425_v18 = vadd.f32 %v424_v16, %v343_v11  ;;  %v495_v19 = vpop.f32.mrb[1].mxu1 }
 0x164   : > { %v502_v20 = vmul.f32 %v423_v14, %v423_v14  ;;  %v496_v21 = vadd.f32 %v495_v19, %v351_v12  ;;  %v498_v49 = vmul.f32 0.5, %v423_v14 }
 0x165   : > { %v504_v22 = vmul.f32 %v494_v17, %v494_v17  ;;  %v503_v23 = vmul.f32 %v425_v18, %v425_v18  ;;  %v499_v46 = vmul.f32 0.5, %v425_v18  ;;  %v500_v52 = vmul.f32 0.5, %v494_v17 }
 0x166   : > { %v506_v24 = vmul.f32 %v502_v20, %v423_v14  ;;  %v505_v25 = vmul.f32 %v496_v21, %v496_v21  ;;  %v501_v50 = vmul.f32 0.5, %v496_v21 }
 0x167   : > { %v508_v26 = vmul.f32 %v504_v22, %v494_v17  ;;  %v507_v27 = vmul.f32 %v503_v23, %v425_v18 }
 0x168   : > { %v510_v28 = vmul.f32 0.044715, %v506_v24  ;;  %v509_v29 = vmul.f32 %v505_v25, %v496_v21 }
 0x169   : > { %v512_v30 = vmul.f32 0.044715, %v508_v26  ;;  %v511_v31 = vmul.f32 0.044715, %v507_v27 }
 0x16a   : > { %v514_v32 = vadd.f32 %v510_v28, %v423_v14  ;;  %v513_v33 = vmul.f32 0.044715, %v509_v29 }
 0x16b   : > { %v516_v34 = vadd.f32 %v512_v30, %v494_v17  ;;  %v515_v35 = vadd.f32 %v511_v31, %v425_v18 }
 0x16c   : > { %v518_v36 = vmul.f32 0.7978846, %v514_v32  ;;  %v517_v37 = vadd.f32 %v513_v33, %v496_v21 }
 0x16d   : > { %v520_v38 = vmul.f32 0.7978846, %v516_v34  ;;  %v519_v39 = vmul.f32 0.7978846, %v515_v35 }
 0x16e   : > { %1136 = vtanh.f32 %v518_v36  ;;  %v521_v40 = vmul.f32 0.7978846, %v517_v37 }
 0x16f   : > { %1138 = vtanh.f32 %v520_v38 }
 0x170   : > { %1140 = vtanh.f32 %v519_v39 }
 0x171   : > { %1142 = vtanh.f32 %v521_v40 }
 0x178   : > { %v1137_v41 = vpop.eup %1136 }
 0x179   : > { %v1139_v42 = vpop.eup %1138  ;;  %v526_v44 = vadd.f32 1.0, %v1137_v41 }
 0x17a   : > { %v1141_v43 = vpop.eup %1140  ;;  %v528_v48 = vadd.f32 1.0, %v1139_v42 }
 0x17b   : > { %v1143_v45 = vpop.eup %1142  ;;  %v527_v47 = vadd.f32 1.0, %v1141_v43  ;;  %v530_v55 = vmul.f32 %v526_v44, %v498_v49 }
 0x17c   : > { %v529_v51 = vadd.f32 1.0, %v1143_v45  ;;  %v532_v56 = vmul.f32 %v528_v48, %v500_v52 }
 0x17d   : > { %v531_v53 = vmul.f32 %v527_v47, %v499_v46 }
 0x17e   : > { %v533_v54 = vmul.f32 %v529_v51, %v501_v50 }
 0x17f   : > { %669 = vmatprep.mubr.f32.mxu0 %v531_v53 }
 0x180   : > { %739 = vmatprep.mubr.f32.mxu1 %v533_v54  ;;  %670 = vmatmul.mubr.f32.vlgmr.msra.gmra.mrb[2].mxu0 %v530_v55 }
 0x181   : > { %740 = vmatmul.mubr.f32.vlgmr.msra.gmra.mrb[2].mxu1 %v532_v56 }
 0x253   : > { %v898_v57 = vpop.f32.mrb[2].mxu0 }
 0x254   : > { %v933_v58 = vpop.f32.mrb[2].mxu1  ;;  %v899_v60 = vpop.f32.mrb[3].mxu0 }
 0x255   : > { %v900_v61 = vadd.f32 %v899_v60, %v898_v57  ;;  %v934_v62 = vpop.f32.mrb[3].mxu1 }
 0x256   : > { %v935_v63 = vadd.f32 %v934_v62, %v933_v58 }
 0x257   : > { %v672_v0 = vadd.f32 %v900_v61, %v861_v59 }
 0x259   : > { %v742_v1 = vadd.f32 %v935_v63, %v672_v0 }
 0x25b   : > { %745 = vst [vmem:[%s268_s13] sm:$0xff] %v742_v1 }
 0x25c   : > { %1243 = shalt.err (!%p1240_p2)
}
 0x25d   : > { %s1244_s14 = scalar_lea.hbm %s1539_s8, 128  ;;  %s1248_s26 = scalar_lea.hbm %s1588_s5, 256 }
 0x25e   : > { %p1245_p13 = scmp.ne.s32.totalorder %s1539_s8, %s1244_s14  ;;  %p1249_p4 = scmp.lt.u32.totalorder %s1539_s8, %s1588_s5 }
 0x25f   : > { %p1250_p7 = scmp.lt.u32.totalorder %s1248_s26, %s1244_s14  ;;  %p1252_p11 = scmp.lt.u32.totalorder %s1244_s14, %s1539_s8 }
 0x260   : > { %p1246_p6 = pnand %p1245_p13, %p1602_p0 }
 0x261   : > { %p1251_p8 = por %p1250_p7, %p1249_p4 }
 0x262   : > { %p1247_p10 = pneg %p1246_p6 }
 0x263   : > { %p1253_p1 = por %p1252_p11, %p1251_p8 }
 0x265   : > { %p1254_p3 = pnand %p1253_p1, %p1247_p10 }
 0x267   : > { %1257 = shalt.err (!%p1254_p3)
}
 0x268   : > { %1074 = dma.vmem_to_hbm [thread:$0]  (%p1602_p0), %s1541_s7, 128, %s1539_s8, %s747_s9  }
 0x269 PF: > { %s772_s12 = sand.u32 1, %s1288_s18   ;;  %p1603_p5 = scmp.ne.s32.totalorder %s1593_s25, 0 }
 0x26a   : > { %p1604_p9 = scmp.ge.s32.totalorder %s1300_s21, 2  ;;  %s773_s13 = scalar_lea.sflag [#allocation4], %s772_s12 }
 0x26c   : > { %p1088_p12 = pnand %p1604_p9, %p1603_p5 }
 0x26e   : > { %1283 = dma.done.wait (!%p1088_p12), %s773_s13, 128  }
 0x26f   : > { %1285 = vsyncadd (!%p1088_p12), %s773_s13, 4294967168  ;;  %p19_p2 = scmp.ge.s32.totalorder %s1451_s16, 4   ;;  %s1605_s18 = smov %s1292_s19 }
 0x270   : > { %s1606_s19 = smov %s1296_s20  ;;  %s1607_s20 = smov %s1460_s27 }
 0x271   : > { %s1608_s21 = smov %s1451_s16  ;;  %21 = sbr.rel (!%p19_p2) target bundleno = 6 (0x6), region = 93 }
 0x278   :  { %778 = vsyncpa [#allocation3], 1 }
 0x279   :  { %780 = vsyncpa [#allocation3 + $0x1], 1 }
 0x27a   :  { %781 = vsyncpa [#allocation6], 1 }
 0x27b   :  { %782 = vsyncpa [#allocation4], 1 }
 0x27c   :  { %784 = vsyncpa [#allocation4 + $0x1], 1 }

</bundles_post_ra>
